<compile_context>
chip_gen: v7x
topology: tpu7x:2x2x1
jax: 0.10.0
libtpu: 0.0.40
codegen_flags: <defaults>
</compile_context>

<pallas_src>
import functools
import math

import numpy as np
import jax
import jax.numpy as jnp
from jax.experimental import pallas as pl
from jax.experimental.pallas import tpu as pltpu


def _cdiv(a, b):
    return -(-a // b)


def _joint_embed_kernel(x_ref, w_ref, pe_ref, out_ref, *, block_rows, pe_rows):
    # x_ref : (block_rows, Dpin)  packed input rows (Dpin = P*J*joint_dim, lane-dense when packed)
    # w_ref : (Dpin, Dpout)       packed block-diagonal fused weight, resident
    # pe_ref: (pe_rows, Dpout)    positional encodings (+bias), resident; repeats every Tp rows
    # out   : (block_rows, Dpout) rows of the final output (packed view of (B, T, J*E))
    y = jnp.dot(x_ref[...], w_ref[...], preferred_element_type=jnp.float32)
    pe = pe_ref[...]
    if block_rows < pe_rows:
        # Tiny-input fallback: single whole-array block; pe rows 0..block_rows-1 line up exactly.
        out = y + pe[:block_rows, :]
    elif block_rows == pe_rows:
        out = y + pe
    else:
        # pe_rows = lcm(Tp, 8) is a multiple of 8 -> sublane-tile-aligned (layout-free) reshape.
        reps = block_rows // pe_rows
        out = (y.reshape(reps, pe_rows, y.shape[-1]) + pe[None, :, :]).reshape(y.shape)
    out_ref[...] = out.astype(out_ref.dtype)


def make_positional_encoding(max_len, d_model):
    """Matches PositionalEncoding.__init__ buffer (max_len, d_model)."""
    position = np.arange(0, max_len, dtype=np.float32)[:, None]
    div_term = np.exp(np.arange(0, d_model, 2, dtype=np.float32) * (-np.log(10000.0) / d_model))
    pe = np.zeros((max_len, d_model), dtype=np.float32)
    pe[:, 0::2] = np.sin(position * div_term)
    pe[:, 1::2] = np.cos(position * div_term)
    return pe


def make_joint_embedding_forward(weights, biases, pe, seq_len, num_joints, joint_dim,
                                 embedding_dim, *, target_block_bytes=8 << 20,
                                 out_dtype=jnp.float32):
    """Precompute fused/packed params once (host-side) and return a one-pallas_call forward.

    weights : (J, joint_dim, embedding_dim)  -- W_i^T stacked (y_i = x_i @ weights[i] + biases[i])
    biases  : (J, embedding_dim)
    pe      : (max_len, embedding_dim)
    """
    J, jd, E = num_joints, joint_dim, embedding_dim
    T = seq_len
    Din, Dout = J * jd, J * E

    weights = np.asarray(weights, dtype=np.float32)
    biases = np.asarray(biases, dtype=np.float32)
    pe = np.asarray(pe, dtype=np.float32)
    assert pe.shape[0] >= T and pe.shape[1] == E

    # Lane-packing factor: pack P timesteps per row so the contraction dim is 128-wide.
    if Din <= 128 and 128 % Din == 0 and T % (128 // Din) == 0:
        P = 128 // Din
    else:
        P = 1
    Tp = T // P
    Dpin, Dpout = P * Din, P * Dout

    # ---- host-side parameter fusion (runs exactly once, zero per-call XLA ops) ----
    # J-way block-diagonal weight: x @ w_bd == concat_j(x_j @ W_j).
    w_bd = np.zeros((Din, Dout), dtype=np.float32)
    for j in range(J):
        w_bd[j * jd:(j + 1) * jd, j * E:(j + 1) * E] = weights[j]
    # P-way block diagonal of the above (one block per packed timestep).
    w_packed_np = np.zeros((Dpin, Dpout), dtype=np.float32)
    for p in range(P):
        w_packed_np[p * Din:(p + 1) * Din, p * Dout:(p + 1) * Dout] = w_bd

    # PE tiled across joints with the fused bias folded in, then packed P timesteps per row.
    pe_rows_tbl = np.tile(pe[:T, :], (1, J)) + biases.reshape(1, Dout)          # (T, Dout)
    pe_packed = pe_rows_tbl.reshape(Tp, Dpout)                                  # (Tp, Dpout)

    # Resident PE buffer of lcm(Tp, 8) rows: keeps in-kernel sublane splits tile-aligned.
    rb_unit = math.lcm(Tp, 8)
    pe_unit_np = np.tile(pe_packed, (rb_unit // Tp, 1))                         # (rb_unit, Dpout)

    w_packed = jnp.asarray(w_packed_np)
    pe_unit = jnp.asarray(pe_unit_np)

    out_isz = jnp.dtype(out_dtype).itemsize
    in_isz = 4
    unit_out_bytes = rb_unit * Dpout * out_isz
    unit_blk_bytes = rb_unit * (Dpin * in_isz + Dpout * out_isz)
    # Keep double-buffered (x + out) blocks comfortably inside v7x's 64 MiB VMEM.
    max_units_vmem = max(1, (24 << 20) // unit_blk_bytes)

    def forward(x):
        assert x.ndim == 3 and x.shape[1] == T and x.shape[2] == Din
        B = x.shape[0]
        total_rows = B * Tp

        n_units = _cdiv(total_rows, rb_unit)
        units = max(1, min(target_block_bytes // unit_out_bytes, n_units, max_units_vmem))
        # Keep grid length >= 2 when possible so ("parallel",) can feed both v7x TensorCores.
        if units >= n_units and n_units >= 2:
            units = _cdiv(n_units, 2)
        rb = units * rb_unit
        if rb >= total_rows:            # tiny input: single whole-array block
            rb = total_rows
        grid = (_cdiv(total_rows, rb),)
        # Note: if total_rows % rb != 0 the last block computes on padded rows; harmless here
        # (per-row independent math, output writes are clipped).

        # Explicit scoped-VMEM limit (v5e's default scoped VMEM is only 16 MiB).
        vmem_limit = int(2 * rb * (Dpin * in_isz + Dpout * out_isz)
                         + 2 * (Dpin * Dpout * 4 + rb_unit * Dpout * 4) + (4 << 20))
        vmem_limit = min(max(vmem_limit, 16 << 20), 64 << 20)

        x2 = x.astype(jnp.float32).reshape(total_rows, Dpin)      # free packing reshape

        kernel = functools.partial(_joint_embed_kernel, block_rows=rb, pe_rows=rb_unit)

        out2 = pl.pallas_call(
            kernel,
            out_shape=jax.ShapeDtypeStruct((total_rows, Dpout), out_dtype),
            grid_spec=pl.GridSpec(
                grid=grid,
                in_specs=[
                    pl.BlockSpec((rb, Dpin), lambda i: (i, 0)),        # streamed x rows
                    pl.BlockSpec((Dpin, Dpout), lambda i: (0, 0)),     # resident fused weight
                    pl.BlockSpec((rb_unit, Dpout), lambda i: (0, 0)),  # resident PE(+bias)
                ],
                out_specs=pl.BlockSpec((rb, Dpout), lambda i: (i, 0)),
            ),
            compiler_params=pltpu.CompilerParams(
                dimension_semantics=("parallel",),
                vmem_limit_bytes=vmem_limit,
            ),
        )(x2, w_packed, pe_unit)
        return out2.reshape(B, T, Dout)                           # free unpacking reshape

    return forward


def reference_forward(x, weights, biases, pe, num_joints, joint_dim, embedding_dim):
    """Pure-JAX reference mirroring the PyTorch forward (eval mode)."""
    B, T, _ = x.shape
    outs = []
    for i in range(num_joints):
        j_i = x[:, :, i * joint_dim:(i + 1) * joint_dim]
        e_i = jnp.einsum("btd,de->bte", j_i, weights[i]) + biases[i]
        outs.append(e_i + pe[None, :T, :])
    return jnp.concatenate(outs, axis=-1)


if __name__ == "__main__":
    num_joints, joint_dim, embedding_dim = 4, 4, 32
    max_len = 300

    key = jax.random.PRNGKey(0)
    k_x1, k_x2, k_w, k_b = jax.random.split(key, 4)

    # Deterministic parameter init (Linear-like uniform(-1/sqrt(in), 1/sqrt(in))).
    bound = 1.0 / np.sqrt(joint_dim)
    weights = jax.random.uniform(k_w, (num_joints, joint_dim, embedding_dim),
                                 minval=-bound, maxval=bound, dtype=jnp.float32)
    biases = jax.random.uniform(k_b, (num_joints, embedding_dim),
                                minval=-bound, maxval=bound, dtype=jnp.float32)
    pe = jnp.asarray(make_positional_encoding(max_len, embedding_dim))

    # Case 1: lane-packed fast path (T % 8 == 0 -> 8 timesteps packed per 128-wide row).
    # Small target_block_bytes so the smoke test exercises a multi-block grid and the
    # multi-repeat PE-add path.
    B1, T1 = 16, 16
    x1 = jax.random.normal(k_x1, (B1, T1, num_joints * joint_dim), dtype=jnp.float32)
    fwd1 = make_joint_embedding_forward(weights, biases, pe, T1, num_joints, joint_dim,
                                        embedding_dim, target_block_bytes=64 * 1024)
    out1 = jax.block_until_ready(fwd1(x1))
    ref1 = reference_forward(x1, weights, biases, pe, num_joints, joint_dim, embedding_dim)
    np.testing.assert_allclose(np.asarray(out1), np.asarray(ref1), rtol=1e-5, atol=1e-5)

    # Case 2: unpacked fallback path (T % 8 != 0 -> P = 1), default block sizing.
    B2, T2 = 4, 12
    x2 = jax.random.normal(k_x2, (B2, T2, num_joints * joint_dim), dtype=jnp.float32)
    fwd2 = make_joint_embedding_forward(weights, biases, pe, T2, num_joints, joint_dim,
                                        embedding_dim)
    out2 = jax.block_until_ready(fwd2(x2))
    ref2 = reference_forward(x2, weights, biases, pe, num_joints, joint_dim, embedding_dim)
    np.testing.assert_allclose(np.asarray(out2), np.asarray(ref2), rtol=1e-5, atol=1e-5)

    print("KERNEL_OK")
</pallas_src>

<mosaic_0001>
module attributes {stable_mosaic.version = 11 : i64} {
  func.func @_joint_embed_kernel(%arg0: i32, %arg1: memref<16x128xf32, #tpu.memory_space<vmem>>, %arg2: memref<128x1024xf32, #tpu.memory_space<vmem>>, %arg3: memref<8x1024xf32, #tpu.memory_space<vmem>>, %arg4: memref<16x1024xf32, #tpu.memory_space<vmem>>) attributes {dimension_semantics = [#tpu.dimension_semantics<parallel>], iteration_bounds = array<i64: 2>, scalar_prefetch = 0 : i64, scratch_operands = 0 : i64, tpu.core_type = #tpu.core_type<tc>, window_params = [{transform_indices = @transform_0, window_bounds = array<i64: 16, 128>}, {pipeline_mode = #tpu.pipeline_mode<synchronous>, transform_indices = @transform_1, window_bounds = array<i64: 128, 1024>}, {pipeline_mode = #tpu.pipeline_mode<synchronous>, transform_indices = @transform_2, window_bounds = array<i64: 8, 1024>}, {transform_indices = @transform_3, window_bounds = array<i64: 16, 1024>}]} {
    %c0 = arith.constant 0 : index
    %c0_0 = arith.constant 0 : index
    %0 = vector.load %arg1[%c0, %c0_0] : memref<16x128xf32, #tpu.memory_space<vmem>>, vector<16x128xf32>
    %c0_1 = arith.constant 0 : index
    %c0_2 = arith.constant 0 : index
    %1 = vector.load %arg2[%c0_1, %c0_2] : memref<128x1024xf32, #tpu.memory_space<vmem>>, vector<128x1024xf32>
    %cst = arith.constant dense<0.000000e+00> : vector<16x1024xf32>
    %2 = tpu.matmul %0, %1, %cst {dimension_numbers = #tpu.dot_dimension_numbers<[1], [0], [0], [1], [0, 0, 1, 1], [], []>} : vector<16x128xf32>, vector<128x1024xf32>, vector<16x1024xf32> -> vector<16x1024xf32>
    %c0_3 = arith.constant 0 : index
    %c0_4 = arith.constant 0 : index
    %3 = vector.load %arg3[%c0_3, %c0_4] : memref<8x1024xf32, #tpu.memory_space<vmem>>, vector<8x1024xf32>
    %4 = vector.shape_cast %2 : vector<16x1024xf32> to vector<2x8x1024xf32>
    %5 = vector.shape_cast %3 : vector<8x1024xf32> to vector<1x8x1024xf32>
    %6 = vector.broadcast %5 : vector<1x8x1024xf32> to vector<2x8x1024xf32>
    %7 = arith.addf %4, %6 : vector<2x8x1024xf32>
    %8 = vector.shape_cast %7 : vector<2x8x1024xf32> to vector<16x1024xf32>
    %c0_5 = arith.constant 0 : index
    %c0_6 = arith.constant 0 : index
    %9 = vector.load %arg4[%c0_5, %c0_6] : memref<16x1024xf32, #tpu.memory_space<vmem>>, vector<16x1024xf32>
    tpu.vector_store %arg4[%c0_5, %c0_6], %8 {strides = array<i32>} : memref<16x1024xf32, #tpu.memory_space<vmem>>, vector<16x1024xf32>,
    return
  }
  func.func @transform_0(%arg0: i32) -> (i32, i32) {
    %c0_i32 = arith.constant 0 : i32
    %c0_i32_0 = arith.constant 0 : i32
    return %arg0, %c0_i32 : i32, i32
  }
  func.func @transform_1(%arg0: i32) -> (i32, i32) {
    %c0_i32 = arith.constant 0 : i32
    %c0_i32_0 = arith.constant 0 : i32
    %c0_i32_1 = arith.constant 0 : i32
    return %c0_i32, %c0_i32_0 : i32, i32
  }
  func.func @transform_2(%arg0: i32) -> (i32, i32) {
    %c0_i32 = arith.constant 0 : i32
    %c0_i32_0 = arith.constant 0 : i32
    %c0_i32_1 = arith.constant 0 : i32
    return %c0_i32, %c0_i32_0 : i32, i32
  }
  func.func @transform_3(%arg0: i32) -> (i32, i32) {
    %c0_i32 = arith.constant 0 : i32
    %c0_i32_0 = arith.constant 0 : i32
    return %arg0, %c0_i32 : i32, i32
  }
}

</mosaic_0001>

<bundles_post_ra>
// kernel: tpu_custom_call.1
= control target key start
LH: loop header
LB: loop body
LE: loop exit
PB: predicated region body
PF: predicated region fallthrough
CT: control target
= control target key end

     0   :  { %8 = vsyncpa [#allocation3], 0  ;;  %s1494_s0 = inlined_call_operand.hbm [shape: f32[32,128], index: 0, kind: input, shape index: {}]   ;;  %s1495_s1 = inlined_call_operand.hbm [shape: f32[128,1024], index: 1, kind: input, shape index: {}]   ;;  %s1496_s2 = inlined_call_operand.hbm [shape: f32[8,1024], index: 2, kind: input, shape index: {}]   ;;  %s1497_s3 = inlined_call_operand.hbm [shape: f32[32,1024], index: 3, kind: output, shape index: {}]  }
   0x1   :  { %10 = vsyncpa [#allocation3 + $0x1], 0 }
   0x2   :  { %11 = vsyncpa [#allocation6], 0 }
   0x3   :  { %12 = vsyncpa [#allocation4], 0 }
   0x4   :  { %14 = vsyncpa [#allocation4 + $0x1], 0  ;;  %s1216_s12 = smov 0   ;;  %s1218_s13 = smov 0  }
   0x5   :  { %s1220_s14 = smov 0   ;;  %s1222_s15 = smov 0  }
   0x6 LB: > { %s1237_s16 = sadd.s32 4294967295, %s1183_s15   ;;  %s803_s17 = sadd.s32 4294967294, %s1183_s15   ;;  %s1183_s15 = sphi %s1222_s15, %s1517_s15   ;;  %s1179_s14 = sphi %s1220_s14, %s1516_s14   ;;  %s1175_s13 = sphi %s1218_s13, %s1515_s13   ;;  %s1171_s12 = sphi %s1216_s12, %s1514_s12  }
   0x7   : > { %p40_p0 = scmp.ne.s32.totalorder %s1175_s13, %s1171_s12  ;;  %p1498_p1 = scmp.eq.s32.totalorder %s1237_s16, 0 }
   0x8   : > { %p112_p3 = scmp.eq.s32.totalorder %s803_s17, 1  ;;  %p804_p5 = scmp.ge.s32.totalorder %s1183_s15, 1 }
   0x9   : > { %p1246_p4 = por %p1498_p1, %p40_p0  ;;  %p119_p7 = scmp.lt.s32.totalorder %s1183_s15, 3 }
   0xa   : > { %p1251_p6 = por %p112_p3, %p40_p0  ;;  %s1185_s21 = smov [#allocation5]  }
   0xb   : > { %s1501_s18 = scalar_select %p1246_p4, 1, 0 }
   0xc   : > { %s1502_s19 = scalar_select %p1251_p6, 1, 0 }
   0xd   : > { %p1256_p8 = pnand %p804_p5, %p119_p7  ;;  %s131_s22 = sshll.u32 %s1185_s21, 4  ;;  %s1260_s22 = int_to_ptr.vmem [resolvable:$true] %s131_s22 }
   0xe   : > { %s1186_s24 = smov [#allocation7]   ;;  %s1027_s28 = scalar_lea.hbm %s1495_s1, 16384 }
   0xf   : > { %p965_p9 = pneg %p1256_p8  ;;  %s145_s25 = sshll.u32 %s1186_s24, 4  ;;  %s1271_s25 = int_to_ptr.vmem [resolvable:$true] %s145_s25 }
  0x10   : > { %p1028_p12 = scmp.ne.s32.totalorder %s1495_s1, %s1027_s28  ;;  %p1034_p5 = scmp.lt.u32.totalorder %s1027_s28, %s1495_s1 }
  0x11   : > { %p1267_p11 = pnand %p965_p9, %p1498_p1 }
  0x13   : > { %p1029_p13 = pneg %p1267_p11 }
  0x15   : > { %p1030_p0 = pnand %p1029_p13, %p1028_p12 }
  0x17   : > { %p1031_p3 = pneg %p1030_p0 }
  0x19   : > { %p1036_p7 = pnand %p1034_p5, %p1031_p3 }
  0x1b   : > { %1039 = shalt.err (!%p1036_p7)
}
  0x1c   : > { %s1040_s6 = scalar_lea.vmem %s1260_s22, 16384  ;;  %p1048_p2 = scmp.lt.s32.totalorder %s1260_s22, %s1260_s22 }
  0x1d   : > { %p1041_p9 = scmp.ne.s32.totalorder %s1260_s22, %s1040_s6  ;;  %p1049_p12 = scmp.lt.s32.totalorder %s1040_s6, %s1040_s6 }
  0x1f   : > { %p1043_p10 = pnand %p1041_p9, %p1029_p13  ;;  %p1050_p0 = por %p1049_p12, %p1048_p2 }
  0x21   : > { %p1044_p1 = pneg %p1043_p10 }
  0x23   : > { %p1051_p6 = pnand %p1050_p0, %p1044_p1 }
  0x25   : > { %1054 = shalt.err (!%p1051_p6)
}
  0x26   : > { %s1187_s7 = smov 1024   ;;  %s1188_s8 = smov 64  }
  0x27   : > { %968 = dma.hbm_to_vmem [thread:$0]  (!%p1267_p11), %s1495_s1, 16384, %s1260_s22, [#allocation6], %s1187_s7, %s1187_s7, %s1188_s8  }
  0x28   : > { %s1055_s21 = scalar_lea.hbm %s1496_s2, 1024 }
  0x29   : > { %p1056_p2 = scmp.ne.s32.totalorder %s1496_s2, %s1055_s21  ;;  %p1062_p10 = scmp.lt.u32.totalorder %s1055_s21, %s1496_s2 }
  0x2b   : > { %p1058_p1 = pnand %p1056_p2, %p1029_p13 }
  0x2d   : > { %p1059_p6 = pneg %p1058_p1 }
  0x2f   : > { %p1064_p3 = pnand %p1062_p10, %p1059_p6 }
  0x31   : > { %1067 = shalt.err (!%p1064_p3)
}
  0x32   : > { %s1068_s22 = scalar_lea.vmem %s1271_s25, 1024  ;;  %p1076_p12 = scmp.lt.s32.totalorder %s1271_s25, %s1271_s25 }
  0x33   : > { %p1069_p5 = scmp.ne.s32.totalorder %s1271_s25, %s1068_s22  ;;  %p1077_p0 = scmp.lt.s32.totalorder %s1068_s22, %s1068_s22 }
  0x35   : > { %p1071_p7 = pnand %p1069_p5, %p1029_p13  ;;  %p1078_p2 = por %p1077_p0, %p1076_p12 }
  0x37   : > { %p1072_p9 = pneg %p1071_p7 }
  0x39   : > { %p1079_p1 = pnand %p1078_p2, %p1072_p9 }
  0x3b   : > { %1082 = shalt.err (!%p1079_p1)
}
  0x3c   : > { %971 = dma.hbm_to_vmem [thread:$0]  (!%p1267_p11), %s1496_s2, 1024, %s1271_s25, [#allocation6]  }
  0x3d   : > { %s1326_s4 = sadd.s32 1, %s1183_s15   ;;  %s27_s23 = sadd.s32 1, %s1179_s14 }
  0x3e   : > { %s24_s5 = ssub.s32 %s1183_s15, %s1326_s4  ;;  %p34_p13 = scmp.ne.s32.totalorder %s1179_s14, %s1175_s13 }
  0x3f   : > { %p25_p6 = scmp.eq.s32.totalorder %s24_s5, 0  ;;  %p35_p10 = scmp.eq.s32.totalorder %s1183_s15, 0 }
  0x40   : > { %p1505_p3 = scmp.eq.s32.totalorder %s1237_s16, 1  ;;  %p982_p7 = scmp.lt.s32.totalorder %s1183_s15, 2 }
  0x41   : > { %s1342_s7 = scalar_select %p25_p6, %s1179_s14, %s27_s23  }
  0x42   : > { %p1336_p5 = por %p1505_p3, %p34_p13  ;;  %p36_p9 = por %p35_p10, %p34_p13 }
  0x43   : > { %s156_s8 = sand.u32 1, %s1179_s14   ;;  %s822_s25 = sshll.u32 %s1183_s15, 8 }
  0x44   : > { %s1506_s6 = scalar_select %p1336_p5, 1, 0 }
  0x45   : > { %s808_s9 = sshll.u32 %s156_s8, 4  ;;  %s1349_s17 = scalar_lea.hbm %s1494_s0, %s822_s25 }
  0x46   : > { %s160_s21 = scalar_lea.vmem [#allocation2], %s808_s9  ;;  %p1353_p11 = pnand %p982_p7, %p36_p9 }
  0x47   : > { %s167_s24 = sshll.u32 %s160_s21, 4  ;;  %s1357_s27 = scalar_lea.sflag [#allocation3], %s156_s8  ;;  %s1351_s24 = int_to_ptr.vmem [resolvable:$true] %s167_s24 }
  0x48   : > { %s1083_s28 = scalar_lea.hbm %s1349_s17, 256  ;;  %p1085_p0 = pneg %p1353_p11 }
  0x49   : > { %p1084_p12 = scmp.ne.s32.totalorder %s1349_s17, %s1083_s28  ;;  %s1088_s30 = scalar_lea.hbm %s1494_s0, 512 }
  0x4a   : > { %p1089_p13 = scmp.lt.u32.totalorder %s1349_s17, %s1494_s0  ;;  %p1090_p6 = scmp.lt.u32.totalorder %s1088_s30, %s1083_s28 }
  0x4b   : > { %p1086_p2 = pnand %p1085_p0, %p1084_p12  ;;  %p1092_p3 = scmp.lt.u32.totalorder %s1083_s28, %s1349_s17 }
  0x4c   : > { %p1091_p10 = por %p1090_p6, %p1089_p13 }
  0x4d   : > { %p1087_p1 = pneg %p1086_p2 }
  0x4e   : > { %p1093_p7 = por %p1092_p3, %p1091_p10 }
  0x50   : > { %p1094_p9 = pnand %p1093_p7, %p1087_p1 }
  0x52   : > { %1097 = shalt.err (!%p1094_p9)
}
  0x53   : > { %s1098_s8 = scalar_lea.vmem %s1351_s24, 256  ;;  %s1189_s9 = smov [#allocation2]  }
  0x54   : > { %p1099_p12 = scmp.ne.s32.totalorder %s1351_s24, %s1098_s8  ;;  %s1103_s25 = sshll.u32 %s1189_s9, 4  ;;  %s1104_s25 = int_to_ptr.vmem [resolvable:$false] %s1103_s25 }
  0x55   : > { %s1105_s10 = scalar_lea.vmem %s1104_s25, 512  ;;  %p1106_p4 = scmp.lt.s32.totalorder %s1351_s24, %s1104_s25 }
  0x56   : > { %p1101_p2 = pnand %p1099_p12, %p1085_p0  ;;  %p1107_p13 = scmp.lt.s32.totalorder %s1105_s10, %s1098_s8 }
  0x58   : > { %p1102_p5 = pneg %p1101_p2  ;;  %p1108_p6 = por %p1107_p13, %p1106_p4 }
  0x5a   : > { %p1109_p10 = pnand %p1108_p6, %p1102_p5 }
  0x5c   : > { %1112 = shalt.err (!%p1109_p10)
}
  0x5d   : > { %s1190_s11 = smov 128   ;;  %s1191_s21 = smov 8  }
  0x5e   : > { %975 = dma.hbm_to_vmem [thread:$0]  (!%p1353_p11), %s1349_s17, 256, %s1351_s24, %s1357_s27, %s1190_s11, %s1190_s11, %s1191_s21  }
  0x5f   : > { %179 = sbr.rel (%p1256_p8) target bundleno = 409 (0x199), region = 32  ;;  %s1388_s28 = sand.u32 (!%p1256_p8), 1, %s1175_s13  }
  0x60   : > { %s812_s22 = sshll.u32 (!%p1256_p8), %s1388_s28, 4  ;;  %s182_s29 = scalar_lea.sflag (!%p1256_p8), [#allocation3], %s1388_s28 }
  0x61   : > { %s1392_s30 = scalar_lea.vmem (!%p1256_p8), [#allocation2], %s812_s22  ;;  %p1508_p4 = scmp.ne.s32.totalorder (!%p1256_p8), %s1501_s18, 0 }
  0x66   : > { %1158 = dma.done.wait (%p1508_p4), %s182_s29, 256  }
  0x67   : > { %1160 = vsyncadd (%p1508_p4), %s182_s29, 4294967040  ;;  %p1509_p5 = scmp.eq.s32.totalorder %s1237_s16, 0 }
  0x69   : > { %1162 = dma.done.wait (%p1509_p5), [#allocation6], 17408   ;;  %p1510_p8 = pmov %p1509_p5 }
  0x6a   : > { %v1192_v0 = vmov 0.0   ;;  %v221_v1 = vld [vmem:[#allocation5 + $0x8] sm:$0xff]  ;;  %v223_v3 = vld [vmem:[#allocation5 + $0x18] sm:$0xff]  ;;  %v220_v6 = vld [vmem:[#allocation5] sm:$0xff]  ;;  %s815_s18 = sshll.u32 %s1388_s28, 7  ;;  %s824_s17 = sshll.u32 %s1237_s16, 11 }
  0x6b   : > { %1164 = vsyncadd (%p1510_p8), [#allocation6], 4294949888  ;;  %412 = vmatprep.mubr.f32.mxu0 %v1192_v0  ;;  %489 = vmatprep.mubr.f32.mxu1 %v1192_v0  ;;  %v229_v2 = vld [vmem:[#allocation5 + $0x48] sm:$0xff]  ;;  %v231_v5 = vld [vmem:[#allocation5 + $0x58] sm:$0xff]  ;;  %s1425_s20 = scalar_lea.vmem [#allocation8], %s815_s18  ;;  %s1444_s16 = scalar_lea.hbm %s1497_s3, %s824_s17 }
  0x6c   : > { %v825_v4 = vpack.c.bf16 %v229_v2, %v221_v1  ;;  %v228_v7 = vld [vmem:[#allocation5 + $0x40] sm:$0xff]  ;;  %v857_v8 = vpack.c.bf16 %v231_v5, %v223_v3  ;;  %v222_v10 = vld [vmem:[#allocation5 + $0x10] sm:$0xff]  ;;  %v237_v12 = vld [vmem:[#allocation5 + $0x88] sm:$0xff]  ;;  %s711_s24 = sshll.u32 %s1425_s20, 4  ;;  %s697_s23 = scalar_lea.sflag [#allocation4], %s1388_s28  ;;  %s1446_s24 = int_to_ptr.vmem [resolvable:$true] %s711_s24 }
  0x6d   : > { %v827_v9 = vpack.c.bf16 %v228_v7, %v220_v6  ;;  %v230_v11 = vld [vmem:[#allocation5 + $0x50] sm:$0xff]  ;;  %v245_v14 = vld [vmem:[#allocation5 + $0xc8] sm:$0xff]  ;;  %v239_v15 = vld [vmem:[#allocation5 + $0x98] sm:$0xff]  ;;  %s1113_s5 = scalar_lea.vmem %s1446_s24, 2048  ;;  %p1511_p0 = scmp.ne.s32.totalorder %s1506_s6, 0 }
  0x6e   : > { %826 = vmatprep.subr.bf16.mxu0 %v825_v4  ;;  %v859_v13 = vpack.c.bf16 %v230_v11, %v222_v10  ;;  %v247_v16 = vld [vmem:[#allocation5 + $0xd8] sm:$0xff]  ;;  %858 = vmatprep.subr.bf16.mxu1 %v857_v8  ;;  %v829_v17 = vpack.c.bf16 %v245_v14, %v237_v12  ;;  %v236_v19 = vld [vmem:[#allocation5 + $0x80] sm:$0xff]  ;;  %v238_v21 = vld [vmem:[#allocation5 + $0x90] sm:$0xff]  ;;  %p1114_p11 = scmp.ne.s32.totalorder %s1446_s24, %s1113_s5  ;;  %s1193_s8 = smov [#allocation8]  }
  0x6f   : > { %828 = vmatpush1.bf16.msra.mxu0 %v827_v9  ;;  %v861_v18 = vpack.c.bf16 %v247_v16, %v239_v15  ;;  %v244_v20 = vld [vmem:[#allocation5 + $0xc0] sm:$0xff]  ;;  %v246_v23 = vld [vmem:[#allocation5 + $0xd0] sm:$0xff]  ;;  %v253_v24 = vld [vmem:[#allocation5 + $0x108] sm:$0xff]  ;;  %s1117_s9 = sshll.u32 %s1193_s8, 4  ;;  %s1118_s9 = int_to_ptr.vmem [resolvable:$false] %s1117_s9 }
  0x70   : > { %860 = vmatpush1.bf16.msra.mxu1 %v859_v13  ;;  %v831_v22 = vpack.c.bf16 %v244_v20, %v236_v19  ;;  %v261_v25 = vld [vmem:[#allocation5 + $0x148] sm:$0xff]  ;;  %830 = vmatprep.subr.bf16.mxu0 %v829_v17  ;;  %v863_v26 = vpack.c.bf16 %v246_v23, %v238_v21  ;;  %v255_v28 = vld [vmem:[#allocation5 + $0x118] sm:$0xff]  ;;  %v252_v30 = vld [vmem:[#allocation5 + $0x100] sm:$0xff]  ;;  %p1115_p1 = pnand %p1114_p11, %p1511_p0  ;;  %s1119_s25 = scalar_lea.vmem %s1118_s9, 4096 }
  0x71   : > { %862 = vmatprep.subr.bf16.mxu1 %v861_v18  ;;  %v833_v27 = vpack.c.bf16 %v261_v25, %v253_v24  ;;  %v263_v29 = vld [vmem:[#allocation5 + $0x158] sm:$0xff]  ;;  %v260_v32 = vld [vmem:[#allocation5 + $0x140] sm:$0xff]  ;;  %v254_v33 = vld [vmem:[#allocation5 + $0x110] sm:$0xff]  ;;  %p1120_p7 = scmp.lt.s32.totalorder %s1446_s24, %s1118_s9  ;;  %p1121_p9 = scmp.lt.s32.totalorder %s1119_s25, %s1113_s5 }
  0x72   : > { %v865_v31 = vpack.c.bf16 %v263_v29, %v255_v28  ;;  %v262_v34 = vld [vmem:[#allocation5 + $0x150] sm:$0xff]  ;;  %v835_v35 = vpack.c.bf16 %v260_v32, %v252_v30  ;;  %v269_v36 = vld [vmem:[#allocation5 + $0x188] sm:$0xff]  ;;  %v271_v38 = vld [vmem:[#allocation5 + $0x198] sm:$0xff]  ;;  %p1116_p3 = pneg %p1115_p1 }
  0x73   : > { %832 = vmatpush1.bf16.msra.mxu0 %v831_v22  ;;  %v277_v37 = vld [vmem:[#allocation5 + $0x1c8] sm:$0xff]  ;;  %v867_v39 = vpack.c.bf16 %v262_v34, %v254_v33  ;;  %v279_v41 = vld [vmem:[#allocation5 + $0x1d8] sm:$0xff]  ;;  %v268_v42 = vld [vmem:[#allocation5 + $0x180] sm:$0xff]  ;;  %p1122_p12 = por %p1121_p9, %p1120_p7 }
  0x74   : > { %864 = vmatpush1.bf16.msra.mxu1 %v863_v26  ;;  %834 = vmatprep.subr.bf16.mxu0 %v833_v27  ;;  %v837_v40 = vpack.c.bf16 %v277_v37, %v269_v36  ;;  %v276_v43 = vld [vmem:[#allocation5 + $0x1c0] sm:$0xff]  ;;  %v869_v44 = vpack.c.bf16 %v279_v41, %v271_v38  ;;  %v270_v45 = vld [vmem:[#allocation5 + $0x190] sm:$0xff]  ;;  %v285_v47 = vld [vmem:[#allocation5 + $0x208] sm:$0xff] }
  0x75   : > { %866 = vmatprep.subr.bf16.mxu1 %v865_v31  ;;  %v278_v46 = vld [vmem:[#allocation5 + $0x1d0] sm:$0xff]  ;;  %v293_v48 = vld [vmem:[#allocation5 + $0x248] sm:$0xff]  ;;  %v287_v49 = vld [vmem:[#allocation5 + $0x218] sm:$0xff]  ;;  %v839_v51 = vpack.c.bf16 %v276_v43, %v268_v42  ;;  %p1123_p2 = pnand %p1122_p12, %p1116_p3 }
  0x76   : > { %v295_v50 = vld [vmem:[#allocation5 + $0x258] sm:$0xff]  ;;  %v871_v52 = vpack.c.bf16 %v278_v46, %v270_v45  ;;  %v841_v53 = vpack.c.bf16 %v293_v48, %v285_v47  ;;  %v284_v54 = vld [vmem:[#allocation5 + $0x200] sm:$0xff]  ;;  %v286_v56 = vld [vmem:[#allocation5 + $0x210] sm:$0xff] }
  0x77   : > { %836 = vmatpush1.bf16.msra.mxu0 %v835_v35  ;;  %v292_v55 = vld [vmem:[#allocation5 + $0x240] sm:$0xff]  ;;  %v873_v57 = vpack.c.bf16 %v295_v50, %v287_v49  ;;  %v294_v58 = vld [vmem:[#allocation5 + $0x250] sm:$0xff]  ;;  %v301_v59 = vld [vmem:[#allocation5 + $0x288] sm:$0xff] }
  0x78   : > { %868 = vmatpush1.bf16.msra.mxu1 %v867_v39  ;;  %838 = vmatprep.subr.bf16.mxu0 %v837_v40  ;;  %v309_v60 = vld [vmem:[#allocation5 + $0x2c8] sm:$0xff]  ;;  %v303_v61 = vld [vmem:[#allocation5 + $0x298] sm:$0xff]  ;;  %v843_v63 = vpack.c.bf16 %v292_v55, %v284_v54  ;;  %v875_v1 = vpack.c.bf16 %v294_v58, %v286_v56  ;;  %v300_v3 = vld [vmem:[#allocation5 + $0x280] sm:$0xff] }
  0x79   : > { %870 = vmatprep.subr.bf16.mxu1 %v869_v44  ;;  %v311_v62 = vld [vmem:[#allocation5 + $0x2d8] sm:$0xff]  ;;  %v845_v2 = vpack.c.bf16 %v309_v60, %v301_v59  ;;  %v308_v4 = vld [vmem:[#allocation5 + $0x2c0] sm:$0xff]  ;;  %v302_v5 = vld [vmem:[#allocation5 + $0x290] sm:$0xff] }
  0x7a   : > { %v877_v6 = vpack.c.bf16 %v311_v62, %v303_v61  ;;  %v310_v7 = vld [vmem:[#allocation5 + $0x2d0] sm:$0xff]  ;;  %v317_v8 = vld [vmem:[#allocation5 + $0x308] sm:$0xff]  ;;  %v319_v10 = vld [vmem:[#allocation5 + $0x318] sm:$0xff]  ;;  %v847_v12 = vpack.c.bf16 %v308_v4, %v300_v3 }
  0x7b   : > { %840 = vmatpush1.bf16.msra.mxu0 %v839_v51  ;;  %v325_v9 = vld [vmem:[#allocation5 + $0x348] sm:$0xff]  ;;  %v327_v11 = vld [vmem:[#allocation5 + $0x358] sm:$0xff]  ;;  %v879_v13 = vpack.c.bf16 %v310_v7, %v302_v5  ;;  %v316_v15 = vld [vmem:[#allocation5 + $0x300] sm:$0xff] }
  0x7c   : > { %872 = vmatpush1.bf16.msra.mxu1 %v871_v52  ;;  %842 = vmatprep.subr.bf16.mxu0 %v841_v53  ;;  %v849_v14 = vpack.c.bf16 %v325_v9, %v317_v8  ;;  %v324_v16 = vld [vmem:[#allocation5 + $0x340] sm:$0xff]  ;;  %v318_v17 = vld [vmem:[#allocation5 + $0x310] sm:$0xff]  ;;  %v881_v18 = vpack.c.bf16 %v327_v11, %v319_v10  ;;  %v333_v20 = vld [vmem:[#allocation5 + $0x388] sm:$0xff] }
  0x7d   : > { %874 = vmatprep.subr.bf16.mxu1 %v873_v57  ;;  %v326_v19 = vld [vmem:[#allocation5 + $0x350] sm:$0xff]  ;;  %v341_v21 = vld [vmem:[#allocation5 + $0x3c8] sm:$0xff]  ;;  %v335_v22 = vld [vmem:[#allocation5 + $0x398] sm:$0xff]  ;;  %v851_v24 = vpack.c.bf16 %v324_v16, %v316_v15 }
  0x7e   : > { %v343_v23 = vld [vmem:[#allocation5 + $0x3d8] sm:$0xff]  ;;  %v883_v25 = vpack.c.bf16 %v326_v19, %v318_v17  ;;  %v853_v26 = vpack.c.bf16 %v341_v21, %v333_v20  ;;  %v332_v27 = vld [vmem:[#allocation5 + $0x380] sm:$0xff]  ;;  %v334_v29 = vld [vmem:[#allocation5 + $0x390] sm:$0xff] }
  0x7f   : > { %844 = vmatpush1.bf16.msra.mxu0 %v843_v63  ;;  %v340_v28 = vld [vmem:[#allocation5 + $0x3c0] sm:$0xff]  ;;  %v885_v30 = vpack.c.bf16 %v343_v23, %v335_v22  ;;  %v342_v31 = vld [vmem:[#allocation5 + $0x3d0] sm:$0xff]  ;;  %v225_v32 = vld [vmem:[#allocation5 + $0x28] sm:$0xff] }
  0x80   : > { %876 = vmatpush1.bf16.msra.mxu1 %v875_v1  ;;  %846 = vmatprep.subr.bf16.mxu0 %v845_v2  ;;  %v233_v33 = vld [vmem:[#allocation5 + $0x68] sm:$0xff]  ;;  %v227_v34 = vld [vmem:[#allocation5 + $0x38] sm:$0xff]  ;;  %v855_v36 = vpack.c.bf16 %v340_v28, %v332_v27  ;;  %v887_v37 = vpack.c.bf16 %v342_v31, %v334_v29  ;;  %v224_v39 = vld [vmem:[#allocation5 + $0x20] sm:$0xff] }
  0x81   : > { %878 = vmatprep.subr.bf16.mxu1 %v877_v6  ;;  %v235_v35 = vld [vmem:[#allocation5 + $0x78] sm:$0xff]  ;;  %v889_v38 = vpack.c.bf16 %v233_v33, %v225_v32  ;;  %v232_v40 = vld [vmem:[#allocation5 + $0x60] sm:$0xff]  ;;  %v226_v41 = vld [vmem:[#allocation5 + $0x30] sm:$0xff] }
  0x82   : > { %v921_v42 = vpack.c.bf16 %v235_v35, %v227_v34  ;;  %v234_v43 = vld [vmem:[#allocation5 + $0x70] sm:$0xff]  ;;  %v241_v44 = vld [vmem:[#allocation5 + $0xa8] sm:$0xff]  ;;  %v243_v46 = vld [vmem:[#allocation5 + $0xb8] sm:$0xff]  ;;  %v891_v49 = vpack.c.bf16 %v232_v40, %v224_v39 }
  0x83   : > { %848 = vmatpush1.bf16.msra.mxu0 %v847_v12  ;;  %v249_v45 = vld [vmem:[#allocation5 + $0xe8] sm:$0xff]  ;;  %v251_v47 = vld [vmem:[#allocation5 + $0xf8] sm:$0xff]  ;;  %v1405_v48 = vld [vmem:[%s1392_s30] sm:$0xff]  ;;  %v923_v50 = vpack.c.bf16 %v234_v43, %v226_v41 }
  0x84   : > { %880 = vmatpush1.bf16.msra.mxu1 %v879_v13  ;;  %850 = vmatprep.subr.bf16.mxu0 %v849_v14  ;;  %v893_v51 = vpack.c.bf16 %v249_v45, %v241_v44  ;;  %v240_v52 = vld [vmem:[#allocation5 + $0xa0] sm:$0xff]  ;;  %v242_v54 = vld [vmem:[#allocation5 + $0xb0] sm:$0xff]  ;;  %v925_v55 = vpack.c.bf16 %v251_v47, %v243_v46  ;;  %v257_v57 = vld [vmem:[#allocation5 + $0x128] sm:$0xff] }
  0x85   : > { %882 = vmatprep.subr.bf16.mxu1 %v881_v18  ;;  %v248_v53 = vld [vmem:[#allocation5 + $0xe0] sm:$0xff]  ;;  %v250_v56 = vld [vmem:[#allocation5 + $0xf0] sm:$0xff]  ;;  %v265_v58 = vld [vmem:[#allocation5 + $0x168] sm:$0xff] }
  0x86   : > { %v259_v59 = vld [vmem:[#allocation5 + $0x138] sm:$0xff]  ;;  %v895_v61 = vpack.c.bf16 %v248_v53, %v240_v52  ;;  %v927_v62 = vpack.c.bf16 %v250_v56, %v242_v54  ;;  %v897_v63 = vpack.c.bf16 %v265_v58, %v257_v57  ;;  %v256_v1 = vld [vmem:[#allocation5 + $0x120] sm:$0xff]  ;;  %v258_v3 = vld [vmem:[#allocation5 + $0x130] sm:$0xff] }
  0x87   : > { %852 = vmatpush1.bf16.msra.mxu0 %v851_v24  ;;  %v267_v60 = vld [vmem:[#allocation5 + $0x178] sm:$0xff]  ;;  %v264_v2 = vld [vmem:[#allocation5 + $0x160] sm:$0xff]  ;;  %v266_v5 = vld [vmem:[#allocation5 + $0x170] sm:$0xff] }
  0x88   : > { %884 = vmatpush1.bf16.msra.mxu1 %v883_v25  ;;  %854 = vmatprep.subr.bf16.mxu0 %v853_v26  ;;  %v929_v4 = vpack.c.bf16 %v267_v60, %v259_v59  ;;  %v273_v6 = vld [vmem:[#allocation5 + $0x1a8] sm:$0xff]  ;;  %v275_v8 = vld [vmem:[#allocation5 + $0x1b8] sm:$0xff]  ;;  %v899_v10 = vpack.c.bf16 %v264_v2, %v256_v1  ;;  %v931_v12 = vpack.c.bf16 %v266_v5, %v258_v3  ;;  %v272_v14 = vld [vmem:[#allocation5 + $0x1a0] sm:$0xff] }
  0x89   : > { %886 = vmatprep.subr.bf16.mxu1 %v885_v30  ;;  %v281_v7 = vld [vmem:[#allocation5 + $0x1e8] sm:$0xff]  ;;  %v283_v9 = vld [vmem:[#allocation5 + $0x1f8] sm:$0xff]  ;;  %v280_v15 = vld [vmem:[#allocation5 + $0x1e0] sm:$0xff] }
  0x8a   : > { %v1412_v11 = vld [vmem:[%s1392_s30 + $0x8] sm:$0xff]  ;;  %v901_v13 = vpack.c.bf16 %v281_v7, %v273_v6  ;;  %v274_v16 = vld [vmem:[#allocation5 + $0x1b0] sm:$0xff]  ;;  %v933_v17 = vpack.c.bf16 %v283_v9, %v275_v8  ;;  %v903_v23 = vpack.c.bf16 %v280_v15, %v272_v14  ;;  %v288_v26 = vld [vmem:[#allocation5 + $0x220] sm:$0xff] }
  0x8b   : > { %856 = vmatpush1.bf16.msra.mxu0 %v855_v36  ;;  %v282_v18 = vld [vmem:[#allocation5 + $0x1f0] sm:$0xff]  ;;  %v289_v19 = vld [vmem:[#allocation5 + $0x228] sm:$0xff]  ;;  %v291_v21 = vld [vmem:[#allocation5 + $0x238] sm:$0xff] }
  0x8c   : > { %888 = vmatpush1.bf16.msra.mxu1 %v887_v37  ;;  %890 = vmatprep.subr.bf16.mxu0 %v889_v38  ;;  %v297_v20 = vld [vmem:[#allocation5 + $0x268] sm:$0xff]  ;;  %v299_v22 = vld [vmem:[#allocation5 + $0x278] sm:$0xff]  ;;  %v935_v24 = vpack.c.bf16 %v282_v18, %v274_v16  ;;  %v296_v27 = vld [vmem:[#allocation5 + $0x260] sm:$0xff] }
  0x8d   : > { %922 = vmatprep.subr.bf16.mxu1 %v921_v42  ;;  %v905_v25 = vpack.c.bf16 %v297_v20, %v289_v19  ;;  %v290_v28 = vld [vmem:[#allocation5 + $0x230] sm:$0xff]  ;;  %v937_v29 = vpack.c.bf16 %v299_v22, %v291_v21  ;;  %v305_v31 = vld [vmem:[#allocation5 + $0x2a8] sm:$0xff]  ;;  %v307_v33 = vld [vmem:[#allocation5 + $0x2b8] sm:$0xff]  ;;  %v907_v35 = vpack.c.bf16 %v296_v27, %v288_v26 }
  0x8e   : > { %413 = vmatmul.mubr.f32.vlgmr.msra.gmra.mrb[0].mxu0 %v1405_v48  ;;  %v298_v30 = vld [vmem:[#allocation5 + $0x270] sm:$0xff]  ;;  %v313_v32 = vld [vmem:[#allocation5 + $0x2e8] sm:$0xff]  ;;  %v315_v34 = vld [vmem:[#allocation5 + $0x2f8] sm:$0xff] }
  0x8f   : > { %490 = vmatmul.mubr.f32.vlgmr.msra.gmra.mrb[0].mxu1 %v1405_v48  ;;  %892 = vmatpush1.bf16.msra.mxu0 %v891_v49  ;;  %v939_v36 = vpack.c.bf16 %v298_v30, %v290_v28  ;;  %v909_v37 = vpack.c.bf16 %v313_v32, %v305_v31  ;;  %v304_v38 = vld [vmem:[#allocation5 + $0x2a0] sm:$0xff]  ;;  %v306_v40 = vld [vmem:[#allocation5 + $0x2b0] sm:$0xff]  ;;  %v941_v41 = vpack.c.bf16 %v315_v34, %v307_v33  ;;  %v321_v43 = vld [vmem:[#allocation5 + $0x328] sm:$0xff] }
  0x90   : > { %924 = vmatpush1.bf16.msra.mxu1 %v923_v50  ;;  %894 = vmatprep.subr.bf16.mxu0 %v893_v51  ;;  %v312_v39 = vld [vmem:[#allocation5 + $0x2e0] sm:$0xff]  ;;  %v314_v42 = vld [vmem:[#allocation5 + $0x2f0] sm:$0xff]  ;;  %v329_v44 = vld [vmem:[#allocation5 + $0x368] sm:$0xff] }
  0x91   : > { %926 = vmatprep.subr.bf16.mxu1 %v925_v55  ;;  %418 = vmatprep.mubr.f32.mxu0 %v1192_v0  ;;  %v323_v45 = vld [vmem:[#allocation5 + $0x338] sm:$0xff]  ;;  %v911_v47 = vpack.c.bf16 %v312_v39, %v304_v38  ;;  %v943_v49 = vpack.c.bf16 %v314_v42, %v306_v40  ;;  %v913_v50 = vpack.c.bf16 %v329_v44, %v321_v43  ;;  %v320_v51 = vld [vmem:[#allocation5 + $0x320] sm:$0xff]  ;;  %v322_v53 = vld [vmem:[#allocation5 + $0x330] sm:$0xff] }
  0x92   : > { %495 = vmatprep.mubr.f32.mxu1 %v1192_v0  ;;  %419 = vmatmul.mubr.f32.gmra.mrb[2].mxu0 %v1412_v11  ;;  %v331_v46 = vld [vmem:[#allocation5 + $0x378] sm:$0xff]  ;;  %v328_v52 = vld [vmem:[#allocation5 + $0x360] sm:$0xff]  ;;  %v330_v55 = vld [vmem:[#allocation5 + $0x370] sm:$0xff] }
  0x93   : > { %896 = vmatpush1.bf16.msra.mxu0 %v895_v61  ;;  %496 = vmatmul.mubr.f32.gmra.mrb[2].mxu1 %v1412_v11  ;;  %v945_v54 = vpack.c.bf16 %v331_v46, %v323_v45  ;;  %v337_v56 = vld [vmem:[#allocation5 + $0x3a8] sm:$0xff]  ;;  %v339_v58 = vld [vmem:[#allocation5 + $0x3b8] sm:$0xff]  ;;  %v915_v60 = vpack.c.bf16 %v328_v52, %v320_v51  ;;  %v947_v61 = vpack.c.bf16 %v330_v55, %v322_v53  ;;  %v344_v1 = vld [vmem:[#allocation5 + $0x3e0] sm:$0xff] }
  0x94   : > { %928 = vmatpush1.bf16.msra.mxu1 %v927_v62  ;;  %898 = vmatprep.subr.bf16.mxu0 %v897_v63  ;;  %v345_v57 = vld [vmem:[#allocation5 + $0x3e8] sm:$0xff]  ;;  %v347_v59 = vld [vmem:[#allocation5 + $0x3f8] sm:$0xff]  ;;  %v336_v63 = vld [vmem:[#allocation5 + $0x3a0] sm:$0xff] }
  0x95   : > { %930 = vmatprep.subr.bf16.mxu1 %v929_v4  ;;  %566 = vmatprep.mubr.f32.mxu0 %v1192_v0  ;;  %v917_v62 = vpack.c.bf16 %v345_v57, %v337_v56  ;;  %v949_v2 = vpack.c.bf16 %v347_v59, %v339_v58  ;;  %v338_v3 = vld [vmem:[#allocation5 + $0x3b0] sm:$0xff]  ;;  %v919_v5 = vpack.c.bf16 %v344_v1, %v336_v63  ;;  %v656_v7 = vld [vmem:[#allocation7] sm:$0xff]  ;;  %v657_v9 = vld [vmem:[#allocation7 + $0x8] sm:$0xff] }
  0x96   : > { %643 = vmatprep.mubr.f32.mxu1 %v1192_v0  ;;  %v346_v4 = vld [vmem:[#allocation5 + $0x3f0] sm:$0xff]  ;;  %v661_v27 = vld [vmem:[#allocation7 + $0x28] sm:$0xff] }
  0x97   : > { %900 = vmatpush1.bf16.msra.mxu0 %v899_v10  ;;  %v951_v6 = vpack.c.bf16 %v346_v4, %v338_v3  ;;  %v658_v8 = vld [vmem:[#allocation7 + $0x10] sm:$0xff] }
  0x98   : > { %932 = vmatpush1.bf16.msra.mxu1 %v931_v12  ;;  %902 = vmatprep.subr.bf16.mxu0 %v901_v13  ;;  %v659_v12 = vld [vmem:[#allocation7 + $0x18] sm:$0xff]  ;;  %v662_v26 = vld [vmem:[#allocation7 + $0x30] sm:$0xff] }
  0x99   : > { %934 = vmatprep.subr.bf16.mxu1 %v933_v17 }
  0x9b   : > { %904 = vmatpush1.bf16.msra.mxu0 %v903_v23 }
  0x9c   : > { %936 = vmatpush1.bf16.msra.mxu1 %v935_v24  ;;  %906 = vmatprep.subr.bf16.mxu0 %v905_v25  ;;  %v660_v25 = vld [vmem:[#allocation7 + $0x20] sm:$0xff] }
  0x9d   : > { %938 = vmatprep.subr.bf16.mxu1 %v937_v29  ;;  %v663_v29 = vld [vmem:[#allocation7 + $0x38] sm:$0xff] }
  0x9f   : > { %908 = vmatpush1.bf16.msra.mxu0 %v907_v35 }
  0xa0   : > { %940 = vmatpush1.bf16.msra.mxu1 %v939_v36  ;;  %910 = vmatprep.subr.bf16.mxu0 %v909_v37 }
  0xa1   : > { %942 = vmatprep.subr.bf16.mxu1 %v941_v41 }
  0xa3   : > { %912 = vmatpush1.bf16.msra.mxu0 %v911_v47 }
  0xa4   : > { %944 = vmatpush1.bf16.msra.mxu1 %v943_v49  ;;  %914 = vmatprep.subr.bf16.mxu0 %v913_v50 }
  0xa5   : > { %946 = vmatprep.subr.bf16.mxu1 %v945_v54 }
  0xa7   : > { %916 = vmatpush1.bf16.msra.mxu0 %v915_v60 }
  0xa8   : > { %948 = vmatpush1.bf16.msra.mxu1 %v947_v61  ;;  %918 = vmatprep.subr.bf16.mxu0 %v917_v62 }
  0xa9   : > { %950 = vmatprep.subr.bf16.mxu1 %v949_v2 }
  0xab   : > { %920 = vmatpush1.bf16.msra.mxu0 %v919_v5 }
  0xac   : > { %952 = vmatpush1.bf16.msra.mxu1 %v951_v6 }
  0xae   : > { %567 = vmatmul.mubr.f32.vlgmr.msra.gmra.mrb[4].mxu0 %v1405_v48 }
  0xaf   : > { %644 = vmatmul.mubr.f32.vlgmr.msra.gmra.mrb[4].mxu1 %v1405_v48  ;;  %572 = vmatprep.mubr.f32.mxu0 %v1192_v0 }
  0xb0   : > { %649 = vmatprep.mubr.f32.mxu1 %v1192_v0 }
  0xb2   : > { %573 = vmatmul.mubr.f32.gmra.mrb[6].mxu0 %v1412_v11 }
  0xb3   : > { %650 = vmatmul.mubr.f32.gmra.mrb[6].mxu1 %v1412_v11 }
 0x161   : > { %v414_v10 = vpop.f32.mrb[0].mxu0 }
 0x162   : > { %v664_v13 = vadd.f32 %v656_v7, %v414_v10  ;;  %v491_v14 = vpop.f32.mrb[0].mxu1  ;;  %v416_v15 = vpop.f32.mrb[1].mxu0 }
 0x163   : > { %v666_v16 = vadd.f32 %v658_v8, %v491_v14  ;;  %v665_v17 = vadd.f32 %v657_v9, %v416_v15  ;;  %v493_v48 = vpop.f32.mrb[1].mxu1 }
 0x164   : > { %680 = vst [vmem:[%s1425_s20] sm:$0xff] %v664_v13  ;;  %v667_v0 = vadd.f32 %v659_v12, %v493_v48 }
 0x165   : > { %682 = vst [vmem:[%s1425_s20 + $0x10] sm:$0xff] %v666_v16  ;;  %681 = vst [vmem:[%s1425_s20 + $0x8] sm:$0xff] %v665_v17  ;;  %v420_v11 = vpop.f32.mrb[2].mxu0 }
 0x166   : > { %683 = vst [vmem:[%s1425_s20 + $0x18] sm:$0xff] %v667_v0  ;;  %v672_v18 = vadd.f32 %v656_v7, %v420_v11  ;;  %v497_v19 = vpop.f32.mrb[2].mxu1  ;;  %v422_v20 = vpop.f32.mrb[3].mxu0 }
 0x167   : > { %v674_v21 = vadd.f32 %v658_v8, %v497_v19  ;;  %v673_v22 = vadd.f32 %v657_v9, %v422_v20  ;;  %v499_v23 = vpop.f32.mrb[3].mxu1 }
 0x168   : > { %688 = vst [vmem:[%s1425_s20 + $0x40] sm:$0xff] %v672_v18  ;;  %v675_v24 = vadd.f32 %v659_v12, %v499_v23 }
 0x169   : > { %690 = vst [vmem:[%s1425_s20 + $0x50] sm:$0xff] %v674_v21  ;;  %689 = vst [vmem:[%s1425_s20 + $0x48] sm:$0xff] %v673_v22 }
 0x16a   : > { %691 = vst [vmem:[%s1425_s20 + $0x58] sm:$0xff] %v675_v24 }
 0x181   : > { %v568_v28 = vpop.f32.mrb[4].mxu0 }
 0x182   : > { %v668_v30 = vadd.f32 %v660_v25, %v568_v28  ;;  %v645_v31 = vpop.f32.mrb[4].mxu1  ;;  %v570_v32 = vpop.f32.mrb[5].mxu0 }
 0x183   : > { %v670_v33 = vadd.f32 %v662_v26, %v645_v31  ;;  %v669_v34 = vadd.f32 %v661_v27, %v570_v32  ;;  %v647_v35 = vpop.f32.mrb[5].mxu1 }
 0x184   : > { %684 = vst [vmem:[%s1425_s20 + $0x20] sm:$0xff] %v668_v30  ;;  %v671_v36 = vadd.f32 %v663_v29, %v647_v35 }
 0x185   : > { %686 = vst [vmem:[%s1425_s20 + $0x30] sm:$0xff] %v670_v33  ;;  %685 = vst [vmem:[%s1425_s20 + $0x28] sm:$0xff] %v669_v34  ;;  %v574_v37 = vpop.f32.mrb[6].mxu0 }
 0x186   : > { %687 = vst [vmem:[%s1425_s20 + $0x38] sm:$0xff] %v671_v36  ;;  %v676_v38 = vadd.f32 %v660_v25, %v574_v37  ;;  %v651_v39 = vpop.f32.mrb[6].mxu1  ;;  %v576_v40 = vpop.f32.mrb[7].mxu0 }
 0x187   : > { %v678_v41 = vadd.f32 %v662_v26, %v651_v39  ;;  %v677_v42 = vadd.f32 %v661_v27, %v576_v40  ;;  %v653_v43 = vpop.f32.mrb[7].mxu1 }
 0x188   : > { %692 = vst [vmem:[%s1425_s20 + $0x60] sm:$0xff] %v676_v38  ;;  %v679_v44 = vadd.f32 %v663_v29, %v653_v43 }
 0x189   : > { %694 = vst [vmem:[%s1425_s20 + $0x70] sm:$0xff] %v678_v41  ;;  %693 = vst [vmem:[%s1425_s20 + $0x68] sm:$0xff] %v677_v42 }
 0x18a   : > { %695 = vst [vmem:[%s1425_s20 + $0x78] sm:$0xff] %v679_v44 }
 0x18b   : > { %1126 = shalt.err (!%p1123_p2)
}
 0x18c   : > { %s1127_s10 = scalar_lea.hbm %s1444_s16, 2048  ;;  %s1131_s22 = scalar_lea.hbm %s1497_s3, 4096 }
 0x18d   : > { %p1128_p13 = scmp.ne.s32.totalorder %s1444_s16, %s1127_s10  ;;  %p1132_p4 = scmp.lt.u32.totalorder %s1444_s16, %s1497_s3 }
 0x18e   : > { %p1133_p5 = scmp.lt.u32.totalorder %s1131_s22, %s1127_s10  ;;  %p1135_p11 = scmp.lt.u32.totalorder %s1127_s10, %s1444_s16 }
 0x18f   : > { %p1129_p6 = pnand %p1128_p13, %p1511_p0 }
 0x190   : > { %p1134_p8 = por %p1133_p5, %p1132_p4 }
 0x191   : > { %p1130_p10 = pneg %p1129_p6 }
 0x192   : > { %p1136_p1 = por %p1135_p11, %p1134_p8 }
 0x194   : > { %p1137_p3 = pnand %p1136_p1, %p1130_p10 }
 0x196   : > { %1140 = shalt.err (!%p1137_p3)
}
 0x197   : > { %s1194_s18 = smov 1024   ;;  %s1195_s20 = smov 64  }
 0x198   : > { %963 = dma.vmem_to_hbm [thread:$0]  (%p1511_p0), %s1446_s24, 2048, %s1444_s16, %s697_s23, %s1194_s18, %s1194_s18, %s1195_s20  }
 0x199 PF: > { %s726_s17 = sand.u32 1, %s1171_s12   ;;  %p1512_p7 = scmp.ne.s32.totalorder %s1502_s19, 0 }
 0x19a   : > { %p1513_p9 = scmp.ge.s32.totalorder %s1183_s15, 2  ;;  %s727_s26 = scalar_lea.sflag [#allocation4], %s726_s17 }
 0x19c   : > { %p977_p12 = pnand %p1513_p9, %p1512_p7 }
 0x19e   : > { %1166 = dma.done.wait (!%p977_p12), %s727_s26, 2048  }
 0x19f   : > { %1168 = vsyncadd (!%p977_p12), %s727_s26, 4294965248  ;;  %p17_p2 = scmp.ge.s32.totalorder %s1326_s4, 4   ;;  %s1514_s12 = smov %s1175_s13 }
 0x1a0   : > { %s1515_s13 = smov %s1179_s14  ;;  %s1516_s14 = smov %s1342_s7 }
 0x1a1   : > { %s1517_s15 = smov %s1326_s4  ;;  %19 = sbr.rel (!%p17_p2) target bundleno = 6 (0x6), region = 85 }
 0x1a8   :  { %732 = vsyncpa [#allocation3], 1 }
 0x1a9   :  { %734 = vsyncpa [#allocation3 + $0x1], 1 }
 0x1aa   :  { %735 = vsyncpa [#allocation6], 1 }
 0x1ab   :  { %736 = vsyncpa [#allocation4], 1 }
 0x1ac   :  { %738 = vsyncpa [#allocation4 + $0x1], 1 }

</bundles_post_ra>
